<compile_context>
chip_gen: v6e
topology: v6e:2x2x1
jax: 0.10.0
libtpu: 0.0.40
codegen_flags: <defaults>
</compile_context>

<pallas_src>
import jax
import jax.numpy as jnp
from jax.experimental import pallas as pl
from jax.experimental.pallas import tpu as pltpu

_LANES = 128
_SUBLANES = 8
_PAD_UNIT = _SUBLANES * _LANES                      # 1024 elements
_BLOCK_BYTES_TARGET = 2 * 1024 * 1024               # ~2 MiB per (tb, 128) block
_VMEM_LIMIT_BYTES = 16 * 1024 * 1024                 # safe on v5e/v6e/v7x


# ---------------------------------------------------------------------------
# Fast path: zero-DMA identity (ANY memory space + output aliases input).
# ---------------------------------------------------------------------------
def _noop_identity_kernel(x_ref, o_ref):
    del x_ref
    # o_ref aliases the input HBM buffer (input_output_aliases={0: 0}); the data
    # is already in place, so no DMA and no compute are needed.  touch() only
    # pins a fake read+write dependency on the aliased output.
    touch = getattr(pltpu, "touch", None)
    if touch is not None:
        touch(o_ref)
    # else: empty body — the aliasing alone carries the data through.


def _zero_dma_identity(x):
    return pl.pallas_call(
        _noop_identity_kernel,
        out_shape=jax.ShapeDtypeStruct(x.shape, x.dtype),
        in_specs=[pl.BlockSpec(memory_space=pl.ANY)],
        out_specs=pl.BlockSpec(memory_space=pl.ANY),
        input_output_aliases={0: 0},
    )(x)


_zero_dma_supported = None  # decided lazily by a one-time probe


def _zero_dma_ok():
    """One-time probe: is the ANY-space / aliased no-op kernel usable here?"""
    global _zero_dma_supported
    if _zero_dma_supported is None:
        try:
            probe = jnp.arange(_SUBLANES * _LANES, dtype=jnp.float32).reshape(
                _SUBLANES, _LANES
            )
            out = jax.block_until_ready(_zero_dma_identity(probe))
            _zero_dma_supported = bool(jnp.array_equal(out, probe))
        except Exception:  # unsupported on this jax/libtpu -> use tiled copy
            _zero_dma_supported = False
    return _zero_dma_supported


# ---------------------------------------------------------------------------
# Fallback path: lane-dense tiled VMEM copy (only used if the probe fails).
# ---------------------------------------------------------------------------
def _copy_kernel(x_ref, o_ref):
    o_ref[...] = x_ref[...]


def _tiled_copy_identity(x):
    orig_shape = x.shape
    n = x.size

    # Pad the flattened array to a multiple of 8*128 so it always maps onto
    # lane-dense (rows, 128) blocks with rows % 8 == 0 (no unbounded single
    # full-array block, no masked vst.msk partial stores).
    n_pad = pl.cdiv(n, _PAD_UNIT) * _PAD_UNIT
    flat = x.reshape(-1)
    if n_pad != n:
        flat = jnp.pad(flat, (0, n_pad - n))
    rows = n_pad // _LANES
    xv = flat.reshape(rows, _LANES)

    # dtype-aware block size: ~2 MiB per block (4096 f32 rows / 8192 bf16 rows),
    # rounded to a multiple of 8; 2 in + 2 out double buffers stay <= ~8 MiB.
    target_rows = _BLOCK_BYTES_TARGET // (_LANES * x.dtype.itemsize)
    tb = min(rows, target_rows)
    tb = max(_SUBLANES, (tb // _SUBLANES) * _SUBLANES)

    out = pl.pallas_call(
        _copy_kernel,
        out_shape=jax.ShapeDtypeStruct((rows, _LANES), x.dtype),
        grid=(pl.cdiv(rows, tb),),
        in_specs=[pl.BlockSpec((tb, _LANES), lambda i: (i, 0))],
        out_specs=pl.BlockSpec((tb, _LANES), lambda i: (i, 0)),
        compiler_params=pltpu.CompilerParams(
            dimension_semantics=("arbitrary",),
            vmem_limit_bytes=_VMEM_LIMIT_BYTES,
        ),
    )(xv)

    out = out.reshape(-1)
    if n_pad != n:
        out = out[:n]
    return out.reshape(orig_shape)


# ---------------------------------------------------------------------------
# Public wrapper: Pallas equivalent of Policy.forward(x) -> x.
# ---------------------------------------------------------------------------
def policy_forward(x):
    """Identity forward pass.

    Fast path: a single pallas_call with ANY memory space for both operands and
    input_output_aliases={0: 0}; no DMA is generated, only launch overhead
    remains.  (The framework requires a Pallas kernel; otherwise simply
    returning `x` would be equivalent.)
    """
    if _zero_dma_ok():
        return _zero_dma_identity(x)
    return _tiled_copy_identity(x)


if __name__ == "__main__":
    # Module config (stored in __init__ but unused in forward).
    representation_dim = 32
    action_dim = 8
    action_bound = 1.0
    hidden_dim = 32
    # TODO(synk): Policy.__init__ defines no layers and forward is identity;
    # nonlinearity / action params are never used, so there is nothing else to port.

    key = jax.random.PRNGKey(0)
    k1, k2 = jax.random.split(key)

    # batch=2 latent states of representation_dim=32.
    x1 = jax.random.normal(k1, (2, representation_dim), dtype=jnp.float32)
    expected1 = x1 + 0.0  # independent buffer (safe regardless of aliasing)
    y1 = jax.block_until_ready(policy_forward(x1))
    assert y1.shape == expected1.shape and y1.dtype == expected1.dtype
    assert bool(jnp.all(y1 == expected1))

    # Larger batch, run under jit (typical call site).
    x2 = jax.random.normal(k2, (32, representation_dim), dtype=jnp.float32)
    expected2 = x2 + 0.0
    y2 = jax.block_until_ready(jax.jit(policy_forward)(x2))
    assert y2.shape == expected2.shape and y2.dtype == expected2.dtype
    assert bool(jnp.all(y2 == expected2))

    print("KERNEL_OK")
</pallas_src>

<mosaic_0001>
module attributes {stable_mosaic.version = 11 : i64} {
  func.func @_noop_identity_kernel(%arg0: memref<8x128xf32, #tpu.memory_space<any>>, %arg1: memref<8x128xf32, #tpu.memory_space<any>>) attributes {dimension_semantics = [], scalar_prefetch = 0 : i64, scratch_operands = 0 : i64, tpu.core_type = #tpu.core_type<tc>} {
    return
  }
}

module attributes {stable_mosaic.version = 11 : i64} {
  func.func @_copy_kernel(%arg0: i32, %arg1: memref<8x128xf32, #tpu.memory_space<vmem>>, %arg2: memref<8x128xf32, #tpu.memory_space<vmem>>) attributes {dimension_semantics = [#tpu.dimension_semantics<arbitrary>], iteration_bounds = array<i64: 1>, scalar_prefetch = 0 : i64, scratch_operands = 0 : i64, tpu.core_type = #tpu.core_type<tc>, window_params = [{transform_indices = @transform_0, window_bounds = array<i64: 8, 128>}, {transform_indices = @transform_1, window_bounds = array<i64: 8, 128>}]} {
    %c0 = arith.constant 0 : index
    %c0_0 = arith.constant 0 : index
    %0 = vector.load %arg1[%c0, %c0_0] : memref<8x128xf32, #tpu.memory_space<vmem>>, vector<8x128xf32>
    %c0_1 = arith.constant 0 : index
    %c0_2 = arith.constant 0 : index
    %1 = vector.load %arg2[%c0_1, %c0_2] : memref<8x128xf32, #tpu.memory_space<vmem>>, vector<8x128xf32>
    tpu.vector_store %arg2[%c0_1, %c0_2], %0 {strides = array<i32>} : memref<8x128xf32, #tpu.memory_space<vmem>>, vector<8x128xf32>,
    return
  }
  func.func @transform_0(%arg0: i32) -> (i32, i32) {
    %c0_i32 = arith.constant 0 : i32
    %c0_i32_0 = arith.constant 0 : i32
    return %arg0, %c0_i32 : i32, i32
  }
  func.func @transform_1(%arg0: i32) -> (i32, i32) {
    %c0_i32 = arith.constant 0 : i32
    %c0_i32_0 = arith.constant 0 : i32
    return %arg0, %c0_i32 : i32, i32
  }
}

</mosaic_0001>

<bundles_post_ra>
// kernel: tpu_custom_call.1
= control target key start
LH: loop header
LB: loop body
LE: loop exit
PB: predicated region body
PF: predicated region fallthrough
CT: control target
= control target key end

     0   :  { %s16_s0 = inlined_call_operand.hbm [shape: f32[8,128], index: 0, kind: input, shape index: {}, may-alias: {0,1}]   ;;  %s17_s1 = inlined_call_operand.hbm [shape: f32[8,128], index: 1, kind: output, shape index: {}, may-alias: {0,1}]  }

// kernel: tpu_custom_call.1
= control target key start
LH: loop header
LB: loop body
LE: loop exit
PB: predicated region body
PF: predicated region fallthrough
CT: control target
= control target key end

     0   :  { %6 = vsyncpa [#allocation3], 0  ;;  %s102_s0 = inlined_call_operand.hbm [shape: f32[8,128], index: 0, kind: input, shape index: {}]   ;;  %s103_s1 = inlined_call_operand.hbm [shape: f32[8,128], index: 1, kind: output, shape index: {}]  }
   0x1   :  { %7 = vsyncpa [#allocation4], 0  ;;  %s84_s6 = smov [#allocation2]  }
   0x2   :  { %s14_s7 = sshll.u32 %s84_s6, 4  ;;  %s15_s7 = int_to_ptr.vmem [resolvable:$true] %s14_s7 }
   0x3   :  { %s48_s8 = scalar_lea.vmem %s15_s7, 128  ;;  %p53_p1 = scmp.lt.s32.totalorder %s15_s7, %s15_s7 }
   0x4   :  { %p49_p0 = scmp.ne.s32.totalorder %s15_s7, %s48_s8  ;;  %p54_p2 = scmp.lt.s32.totalorder %s48_s8, %s48_s8 }
   0x6   :  { %p55_p3 = por %p54_p2, %p53_p1 }
   0x8   :  { %p56_p4 = pnand %p55_p3, %p49_p0 }
   0xa   :  { %59 = shalt.err (!%p56_p4)
}
   0xb   :  { %17 = dma.hbm_to_vmem [thread:$0]  %s102_s0, 128, %s15_s7, [#allocation3]  }
   0xc   :  { %80 = dma.done.wait [#allocation3], 128  }
   0xd   :  { %81 = vsyncadd [#allocation3], 4294967168  ;;  %s85_s11 = smov [#allocation5]   ;;  %v21_v0 = vld [vmem:[#allocation2] sm:$0xff] }
   0xe   :  { %s29_s12 = sshll.u32 %s85_s11, 4  ;;  %22 = vst [vmem:[#allocation5] sm:$0xff] %v21_v0  ;;  %s30_s12 = int_to_ptr.vmem [resolvable:$true] %s29_s12 }
   0xf   :  { %s60_s13 = scalar_lea.vmem %s30_s12, 128  ;;  %p65_p6 = scmp.lt.s32.totalorder %s30_s12, %s30_s12 }
  0x10   :  { %p61_p5 = scmp.ne.s32.totalorder %s30_s12, %s60_s13  ;;  %p66_p7 = scmp.lt.s32.totalorder %s60_s13, %s60_s13 }
  0x12   :  { %p67_p8 = por %p66_p7, %p65_p6 }
  0x14   :  { %p68_p9 = pnand %p67_p8, %p61_p5 }
  0x16   :  { %71 = shalt.err (!%p68_p9)
}
  0x17   :  { %32 = dma.vmem_to_hbm [thread:$0]  %s30_s12, 128, %s103_s1, [#allocation4]  }
  0x18   :  { %82 = dma.done.wait [#allocation4], 128  }
  0x19   :  { %83 = vsyncadd [#allocation4], 4294967168 }
  0x1a   :  { %36 = vsyncpa [#allocation3], 1 }
  0x1b   :  { %37 = vsyncpa [#allocation4], 1 }

</bundles_post_ra>
